<compile_context>
chip_gen: v5e
topology: v5e:2x2
jax: 0.10.0
libtpu: 0.0.40
codegen_flags: <defaults>
</compile_context>

<pallas_src>
import functools
import math

import jax
import jax.numpy as jnp
from jax import lax
from jax.experimental import pallas as pl
from jax.experimental.pallas import tpu as pltpu


def _loss_kernel(quad_ref, prd_ref, tar_ref, frac_ref, dacc_ref, tacc_ref,
                 *, thw, hw, hw_ragged):
    """Grid step (i, j): rows block i of (n, c) pairs, spatial block j.

    quad_ref : (1, thw)   quadrature-weight block (streamed, f32).
    prd_ref  : (tc, thw)  prediction rows block (native dtype).
    tar_ref  : (tc, thw)  target rows block (native dtype).
    frac_ref : (tc, 1)    per-row relative norm (written at the last HW block).
    dacc_ref : (tc, 1)    VMEM scratch, running sum_hw w*(prd-tar)^2.
    tacc_ref : (tc, 1)    VMEM scratch, running sum_hw w*tar^2.
    """
    j = pl.program_id(1)

    @pl.when(j == 0)
    def _():
        dacc_ref[...] = jnp.zeros_like(dacc_ref)
        tacc_ref[...] = jnp.zeros_like(tacc_ref)

    w = quad_ref[...]                               # (1, thw), f32
    prd = prd_ref[...].astype(jnp.float32)          # cast in-kernel (bf16 ok)
    tar = tar_ref[...].astype(jnp.float32)

    d = prd - tar
    wt = w * tar                                    # reused for the target norm
    dd = w * (d * d)                                # w * (prd - tar)^2
    tt = wt * tar                                   # w * tar^2

    if hw_ragged:
        # Ragged last HW block: out-of-bounds lanes contain garbage that would
        # feed the accumulators -> zero them out explicitly (mask the products,
        # not just w, so garbage NaN/Inf cannot leak through 0 * Inf).
        col = lax.broadcasted_iota(jnp.int32, (1, thw), 1)
        valid = (j * thw + col) < hw                # (1, thw), broadcasts
        dd = jnp.where(valid, dd, 0.0)
        tt = jnp.where(valid, tt, 0.0)

    dacc_ref[...] += jnp.sum(dd, axis=-1, keepdims=True)   # (tc, 1)
    tacc_ref[...] += jnp.sum(tt, axis=-1, keepdims=True)   # (tc, 1)

    @pl.when(j == pl.num_programs(1) - 1)
    def _():
        # relative, not squared -> (diff/tar) ** (1/p) with p = 2.
        frac_ref[...] = jnp.sqrt(dacc_ref[...]) * lax.rsqrt(tacc_ref[...])


def _cdiv(a, b):
    return (a + b - 1) // b


def _vmem_capacity_bytes(default=64 << 20):
    """Physical VMEM of the current generation (fallback: v7x's 64 MiB)."""
    try:
        info = pltpu.get_tpu_info()
        cap = getattr(info, "vmem_capacity_bytes", None)
        if cap:
            return int(cap)
    except Exception:
        pass
    return default


def _choose_blocks(nc, hw, elem_bytes, per_array_budget):
    """Pick (tc rows, thw lanes) so one prd/tar block stays within budget.

    tc is a multiple of 16 (f32/bf16 sublane tiling) unless it equals NC;
    thw is a multiple of 128 unless it equals HW.
    """
    min_rows = nc if nc <= 16 else 16
    row_bytes = hw * elem_bytes

    if min_rows * row_bytes <= per_array_budget:
        thw = hw                                    # whole spatial extent fits
    else:
        # Shrink the spatial block so at least min_rows rows fit per block.
        thw = (per_array_budget // (min_rows * elem_bytes)) // 128 * 128
        thw = max(128, min(thw, hw))

    tc = per_array_budget // (thw * elem_bytes)
    if tc >= nc:
        tc = nc                                     # full dim -> always legal
    else:
        tc = max(min_rows, (tc // 16) * 16)
    return tc, thw


def loss_handler_forward(prd, tar, inp, chw, quad_weight):
    """Pallas implementation of LossHandler.forward (geometric l2, relative)."""
    del inp  # unused by the loss computation, exactly as in the PyTorch forward
    N, C, H, W = prd.shape
    NC = N * C
    HW = H * W

    # Lane-dense layout: one row per (n, c), spatial dims flattened on lanes.
    # No pad, no upcast: pure reshapes, inputs stream in their native dtype.
    prd2 = prd.reshape(NC, HW)
    tar2 = tar.reshape(NC, HW)
    quad2 = quad_weight.reshape(1, HW).astype(jnp.float32)

    elem_bytes = max(jnp.dtype(prd2.dtype).itemsize, jnp.dtype(tar2.dtype).itemsize)

    # Generation-aware VMEM budgeting: ~80% of physical VMEM as the limit,
    # 1/5 of that per double-buffered input array (prd + tar = 4 buffers),
    # the rest for quad blocks, output, scratch and compiler internals.
    vmem_cap = _vmem_capacity_bytes()
    vmem_limit = int(0.80 * vmem_cap)
    per_array_budget = max(vmem_limit // 5, 1 << 20)

    tc, thw = _choose_blocks(NC, HW, elem_bytes, per_array_budget)
    nblk_nc = _cdiv(NC, tc)
    nblk_hw = _cdiv(HW, thw)
    hw_ragged = (HW % thw) != 0

    kernel = functools.partial(_loss_kernel, thw=thw, hw=HW, hw_ragged=hw_ragged)

    frac = pl.pallas_call(
        kernel,
        grid=(nblk_nc, nblk_hw),
        in_specs=[
            # quadrature weights: streamed (1, thw) blocks, ride the pipeline
            pl.BlockSpec((1, thw), lambda i, j: (0, j)),
            pl.BlockSpec((tc, thw), lambda i, j: (i, j)),
            pl.BlockSpec((tc, thw), lambda i, j: (i, j)),
        ],
        # Output block constant over the HW axis: written once per NC block at
        # the last HW step (accumulator pattern).
        out_specs=pl.BlockSpec((tc, 1), lambda i, j: (i, 0)),
        out_shape=jax.ShapeDtypeStruct((nblk_nc * tc, 1), jnp.float32),
        scratch_shapes=[
            pltpu.VMEM((tc, 1), jnp.float32),   # running diff norm^2 per row
            pltpu.VMEM((tc, 1), jnp.float32),   # running target norm^2 per row
        ],
        compiler_params=pltpu.CompilerParams(
            dimension_semantics=("parallel", "arbitrary"),
            vmem_limit_bytes=vmem_limit,
        ),
    )(quad2, prd2, tar2)

    # Ragged NC tail rows (if any) hold garbage-derived values; slice them off.
    frac = frac[:NC, 0].reshape(N, C)
    # reduction=True, size_average=False -> weighted sum over all (n, c).
    return jnp.sum(chw[None, :] * frac)


def reference_loss(prd, tar, chw, quad_weight):
    """Pure-JAX reference of the same forward pass (for validation)."""
    prd = prd.astype(jnp.float32)
    tar = tar.astype(jnp.float32)
    diff_norm2 = jnp.sum(quad_weight * (prd - tar) ** 2, axis=(-2, -1))   # (N, C)
    tar_norm2 = jnp.sum(quad_weight * tar ** 2, axis=(-2, -1))            # (N, C)
    frac = jnp.sqrt(diff_norm2 / tar_norm2)
    return jnp.sum(chw[None, :] * frac)   # reduction=True, size_average=False


if __name__ == "__main__":
    key = jax.random.PRNGKey(0)
    N, C, H, W = 2, 4, 16, 16
    k1, k2, k3 = jax.random.split(key, 3)
    prd = jax.random.normal(k1, (N, C, H, W), dtype=jnp.float32)
    tar = jax.random.normal(k2, (N, C, H, W), dtype=jnp.float32) + 1.0
    inp = jax.random.normal(k3, (N, C, H, W), dtype=jnp.float32)

    # ---- buffers mirrored from LossHandler.__init__ (deterministic) ----
    # 'weighted' not in loss_type -> channel_weights = ones(C), normalized.
    n_future = 0
    channel_weights = jnp.ones((C,), jnp.float32)
    channel_weights = channel_weights / jnp.sum(channel_weights)
    multistep_weight = jnp.ones((n_future + 1,), jnp.float32) / float(n_future + 1)
    # training-mode chw = (channel_weights * multistep_weight).reshape(1, -1)
    chw = (multistep_weight[:, None] * channel_weights[None, :]).reshape(-1)  # (C,)

    # GridQuadrature('naive', img_shape=(H, W), crop=img_shape, offset=(0, 0),
    #                normalize=True, pole_mask=0)
    jac = jnp.maximum(jnp.sin(jnp.linspace(0.0, math.pi, H)), 0.0)
    dtheta = math.pi / H
    dlambda = 2.0 * math.pi / W
    quad = (dtheta * dlambda) * jnp.tile(jac[:, None], (1, W))
    quad = quad * (4.0 * math.pi) / jnp.sum(quad)   # fix numerical sum to 4*pi
    quad = (quad / (4.0 * math.pi)).astype(jnp.float32)  # normalize=True

    # TODO(synk): GeometricH1Loss branch needs a spherical harmonic transform
    # (torch-harmonics RealSHT) and the distributed spatial-gather path needs
    # collectives; only the single-device "geometric l2" branch is implemented.

    loss = loss_handler_forward(prd, tar, inp, chw, quad)
    loss = jax.block_until_ready(loss)

    ref = reference_loss(prd, tar, chw, quad)
    assert jnp.allclose(loss, ref, rtol=1e-4, atol=1e-6), (float(loss), float(ref))
    print("KERNEL_OK")
</pallas_src>

<mosaic_0001>
module attributes {stable_mosaic.version = 11 : i64} {
  func.func @_loss_kernel(%arg0: i32, %arg1: i32, %arg2: memref<1x256xf32, #tpu.memory_space<vmem>>, %arg3: memref<8x256xf32, #tpu.memory_space<vmem>>, %arg4: memref<8x256xf32, #tpu.memory_space<vmem>>, %arg5: memref<8x1xf32, #tpu.memory_space<vmem>>, %arg6: memref<8x1xf32, #tpu.memory_space<vmem>>, %arg7: memref<8x1xf32, #tpu.memory_space<vmem>>) attributes {dimension_semantics = [#tpu.dimension_semantics<parallel>, #tpu.dimension_semantics<arbitrary>], iteration_bounds = array<i64: 1, 1>, scalar_prefetch = 0 : i64, scratch_operands = 2 : i64, tpu.core_type = #tpu.core_type<tc>, window_params = [{transform_indices = @transform_0, window_bounds = array<i64: 1, 256>}, {transform_indices = @transform_1, window_bounds = array<i64: 8, 256>}, {transform_indices = @transform_2, window_bounds = array<i64: 8, 256>}, {transform_indices = @transform_3, window_bounds = array<i64: 8, 1>}]} {
    %c0_i32 = arith.constant 0 : i32
    %0 = arith.cmpi eq, %arg1, %c0_i32 : i32
    %1 = arith.extui %0 : i1 to i32
    %c0_i32_0 = arith.constant 0 : i32
    %2 = arith.cmpi ne, %1, %c0_i32_0 : i32
    scf.if %2 {
      %cst_17 = arith.constant 0.000000e+00 : f32
      %26 = vector.broadcast %cst_17 : f32 to vector<8x1xf32>
      %c0_18 = arith.constant 0 : index
      %c0_19 = arith.constant 0 : index
      %27 = vector.load %arg6[%c0_18, %c0_19] : memref<8x1xf32, #tpu.memory_space<vmem>>, vector<8x1xf32>
      tpu.vector_store %arg6[%c0_18, %c0_19], %26 {strides = array<i32>} : memref<8x1xf32, #tpu.memory_space<vmem>>, vector<8x1xf32>,
      %cst_20 = arith.constant 0.000000e+00 : f32
      %28 = vector.broadcast %cst_20 : f32 to vector<8x1xf32>
      %c0_21 = arith.constant 0 : index
      %c0_22 = arith.constant 0 : index
      %29 = vector.load %arg7[%c0_21, %c0_22] : memref<8x1xf32, #tpu.memory_space<vmem>>, vector<8x1xf32>
      tpu.vector_store %arg7[%c0_21, %c0_22], %28 {strides = array<i32>} : memref<8x1xf32, #tpu.memory_space<vmem>>, vector<8x1xf32>,
    } else {
    }
    %c0 = arith.constant 0 : index
    %c0_1 = arith.constant 0 : index
    %3 = vector.load %arg2[%c0, %c0_1] : memref<1x256xf32, #tpu.memory_space<vmem>>, vector<1x256xf32>
    %c0_2 = arith.constant 0 : index
    %c0_3 = arith.constant 0 : index
    %4 = vector.load %arg3[%c0_2, %c0_3] : memref<8x256xf32, #tpu.memory_space<vmem>>, vector<8x256xf32>
    %c0_4 = arith.constant 0 : index
    %c0_5 = arith.constant 0 : index
    %5 = vector.load %arg4[%c0_4, %c0_5] : memref<8x256xf32, #tpu.memory_space<vmem>>, vector<8x256xf32>
    %6 = arith.subf %4, %5 : vector<8x256xf32>
    %7 = vector.broadcast %3 : vector<1x256xf32> to vector<8x256xf32>
    %8 = arith.mulf %7, %5 : vector<8x256xf32>
    %9 = arith.mulf %6, %6 : vector<8x256xf32>
    %10 = vector.broadcast %3 : vector<1x256xf32> to vector<8x256xf32>
    %11 = arith.mulf %10, %9 : vector<8x256xf32>
    %12 = arith.mulf %8, %5 : vector<8x256xf32>
    %c0_6 = arith.constant 0 : index
    %c0_7 = arith.constant 0 : index
    %13 = vector.load %arg6[%c0_6, %c0_7] : memref<8x1xf32, #tpu.memory_space<vmem>>, vector<8x1xf32>
    %cst = arith.constant dense<0.000000e+00> : vector<8xf32>
    %14 = vector.multi_reduction <add>, %11, %cst [1] : vector<8x256xf32> to vector<8xf32>
    %15 = vector.shape_cast %14 : vector<8xf32> to vector<8x1xf32>
    %16 = arith.addf %13, %15 : vector<8x1xf32>
    %c0_8 = arith.constant 0 : index
    %c0_9 = arith.constant 0 : index
    %17 = vector.load %arg6[%c0_8, %c0_9] : memref<8x1xf32, #tpu.memory_space<vmem>>, vector<8x1xf32>
    tpu.vector_store %arg6[%c0_8, %c0_9], %16 {strides = array<i32>} : memref<8x1xf32, #tpu.memory_space<vmem>>, vector<8x1xf32>,
    %c0_10 = arith.constant 0 : index
    %c0_11 = arith.constant 0 : index
    %18 = vector.load %arg7[%c0_10, %c0_11] : memref<8x1xf32, #tpu.memory_space<vmem>>, vector<8x1xf32>
    %cst_12 = arith.constant dense<0.000000e+00> : vector<8xf32>
    %19 = vector.multi_reduction <add>, %12, %cst_12 [1] : vector<8x256xf32> to vector<8xf32>
    %20 = vector.shape_cast %19 : vector<8xf32> to vector<8x1xf32>
    %21 = arith.addf %18, %20 : vector<8x1xf32>
    %c0_13 = arith.constant 0 : index
    %c0_14 = arith.constant 0 : index
    %22 = vector.load %arg7[%c0_13, %c0_14] : memref<8x1xf32, #tpu.memory_space<vmem>>, vector<8x1xf32>
    tpu.vector_store %arg7[%c0_13, %c0_14], %21 {strides = array<i32>} : memref<8x1xf32, #tpu.memory_space<vmem>>, vector<8x1xf32>,
    %c0_i32_15 = arith.constant 0 : i32
    %23 = arith.cmpi eq, %arg1, %c0_i32_15 : i32
    %24 = arith.extui %23 : i1 to i32
    %c0_i32_16 = arith.constant 0 : i32
    %25 = arith.cmpi ne, %24, %c0_i32_16 : i32
    scf.if %25 {
      %c0_17 = arith.constant 0 : index
      %c0_18 = arith.constant 0 : index
      %26 = vector.load %arg6[%c0_17, %c0_18] : memref<8x1xf32, #tpu.memory_space<vmem>>, vector<8x1xf32>
      %27 = math.sqrt %26 : vector<8x1xf32>
      %c0_19 = arith.constant 0 : index
      %c0_20 = arith.constant 0 : index
      %28 = vector.load %arg7[%c0_19, %c0_20] : memref<8x1xf32, #tpu.memory_space<vmem>>, vector<8x1xf32>
      %29 = math.rsqrt %28 : vector<8x1xf32>
      %30 = arith.mulf %27, %29 : vector<8x1xf32>
      %c0_21 = arith.constant 0 : index
      %c0_22 = arith.constant 0 : index
      %31 = vector.load %arg5[%c0_21, %c0_22] : memref<8x1xf32, #tpu.memory_space<vmem>>, vector<8x1xf32>
      tpu.vector_store %arg5[%c0_21, %c0_22], %30 {strides = array<i32>} : memref<8x1xf32, #tpu.memory_space<vmem>>, vector<8x1xf32>,
    } else {
    }
    return
  }
  func.func @transform_0(%arg0: i32, %arg1: i32) -> (i32, i32) {
    %c0_i32 = arith.constant 0 : i32
    %c0_i32_0 = arith.constant 0 : i32
    return %c0_i32, %arg1 : i32, i32
  }
  func.func @transform_1(%arg0: i32, %arg1: i32) -> (i32, i32) {
    %c0_i32 = arith.constant 0 : i32
    return %arg0, %arg1 : i32, i32
  }
  func.func @transform_2(%arg0: i32, %arg1: i32) -> (i32, i32) {
    %c0_i32 = arith.constant 0 : i32
    return %arg0, %arg1 : i32, i32
  }
  func.func @transform_3(%arg0: i32, %arg1: i32) -> (i32, i32) {
    %c0_i32 = arith.constant 0 : i32
    %c0_i32_0 = arith.constant 0 : i32
    return %arg0, %c0_i32 : i32, i32
  }
}

</mosaic_0001>

<bundles_post_ra>
// kernel: tpu_custom_call.1
= control target key start
LH: loop header
LB: loop body
LE: loop exit
PB: predicated region body
PF: predicated region fallthrough
CT: control target
= control target key end

     0   :  { %8 = vsyncpa [#allocation5], 0  ;;  %s255_s0 = inlined_call_operand.hbm [shape: f32[1,256], index: 0, kind: input, shape index: {}]   ;;  %s256_s1 = inlined_call_operand.hbm [shape: f32[8,256], index: 1, kind: input, shape index: {}]   ;;  %s257_s2 = inlined_call_operand.hbm [shape: f32[8,256], index: 2, kind: input, shape index: {}]   ;;  %s258_s3 = inlined_call_operand.vmem [shape: f32[8,1], index: 3, kind: output, shape index: {}]  }
   0x1   :  { %9 = vsyncpa [#allocation7], 0  ;;  %s26_s14 = sshll.u32 %s256_s1, 4  ;;  %s214_s15 = smov [#allocation6]   ;;  %s27_s14 = int_to_ptr.hbm [resolvable:$true] %s26_s14 }
   0x2   :  { %s28_s16 = sshll.u32 %s214_s15, 4  ;;  %s15_s19 = sshll.u32 %s255_s0, 4  ;;  %s29_s16 = int_to_ptr.vmem [resolvable:$true] %s28_s16  ;;  %s16_s19 = int_to_ptr.hbm [resolvable:$true] %s15_s19 }
   0x3   :  { %31 = dma.hbm_to_vmem [thread:$0]  %s27_s14, 256, %s29_s16, [#allocation7]  }
   0x4   :  { %s215_s20 = smov [#allocation4]   ;;  %s37_s24 = sshll.u32 %s257_s2, 4  ;;  %s38_s24 = int_to_ptr.hbm [resolvable:$true] %s37_s24 }
   0x5   :  { %s17_s21 = sshll.u32 %s215_s20, 4  ;;  %s216_s1 = smov [#allocation8]   ;;  %s18_s21 = int_to_ptr.vmem [resolvable:$true] %s17_s21 }
   0x6   :  { %20 = dma.hbm_to_vmem [thread:$0]  %s16_s19, 32, %s18_s21, [#allocation5]  }
   0x7   :  { %s39_s25 = sshll.u32 %s216_s1, 4  ;;  %s40_s25 = int_to_ptr.vmem [resolvable:$true] %s39_s25 }
   0x8   :  { %42 = dma.hbm_to_vmem [thread:$0]  %s38_s24, 256, %s40_s25, [#allocation7]  }
   0x9   :  { %210 = dma.done.wait [#allocation5], 32  }
   0xa   :  { %211 = vsyncadd [#allocation5], 4294967264 }
   0xb   :  { %212 = dma.done.wait [#allocation7], 512  }
   0xc   :  { %213 = vsyncadd [#allocation7], 4294966784  ;;  %vm59_vm0 = vcmask 7168   ;;  %v217_v0 = vmov 0.0   ;;  %v62_v1 = vld [vmem:[#allocation4] sm:$0x3] }
   0xd   :  { %60 = vst.msk [vmem:[#allocation2] sm:$0xff] %vm59_vm0, %v217_v0  ;;  %v63_v2 = vld [vmem:[#allocation6] sm:$0xff]  ;;  %v64_v3 = vld [vmem:[#allocation6 + $0x8] sm:$0xff]  ;;  %v65_v4 = vld [vmem:[#allocation8] sm:$0xff]  ;;  %v70_v8 = vperm.slane %v62_v1, 0  ;;  %v71_v9 = vperm.slane %v62_v1, 1 }
   0xe   :  { %61 = vst.msk [vmem:[#allocation3] sm:$0xff] %vm59_vm0, %v217_v0  ;;  %v66_v5 = vld [vmem:[#allocation8 + $0x8] sm:$0xff]  ;;  %v67_v6 = vsub.f32 %v63_v2, %v65_v4 }
   0xf   :  { %v68_v7 = vsub.f32 %v64_v3, %v66_v5  ;;  %v74_v14 = vmul.f32 %v70_v8, %v65_v4  ;;  %v75_v15 = vmul.f32 %v71_v9, %v66_v5 }
  0x10   :  { %v76_v10 = vmul.f32 %v67_v6, %v67_v6 }
  0x11   :  { %v77_v11 = vmul.f32 %v68_v7, %v68_v7  ;;  %v80_v17 = vmul.f32 %v74_v14, %v65_v4  ;;  %v81_v18 = vmul.f32 %v75_v15, %v66_v5 }
  0x12   :  { %v78_v12 = vmul.f32 %v76_v10, %v70_v8 }
  0x13   :  { %v79_v13 = vmul.f32 %v77_v11, %v71_v9  ;;  %v90_v19 = vadd.f32 %v81_v18, %v80_v17 }
  0x14   :  { %v82_v20 = vld [vmem:[#allocation2] sm:$0xff] }
  0x15   :  { %v83_v16 = vadd.f32 %v79_v13, %v78_v12  ;;  %v89_v23 = vld [vmem:[#allocation3] sm:$0xff] }
  0x17   :  { %84 = vadd.xlane.f32.xlu0 %v83_v16 }
  0x1f   :  { %91 = vadd.xlane.f32.xlu0 %v90_v19 }
  0x8a   :  { %v85_v21 = vpop.xlane.xlu0 %84 }
  0x8b   :  { %v86_v22 = vadd.f32 %v85_v21, %v82_v20 }
  0x8d   :  { %88 = vst.msk [vmem:[#allocation2] sm:$0xff] %vm59_vm0, %v86_v22 }
  0x92   :  { %v92_v24 = vpop.xlane.xlu0 %91 }
  0x93   :  { %v93_v25 = vadd.f32 %v92_v24, %v89_v23 }
  0x94   :  { %v98_v26 = vld [vmem:[#allocation2] sm:$0xff] }
  0x95   :  { %134 = vrsqrt.f32 %v98_v26  ;;  %94 = vst.msk [vmem:[#allocation3] sm:$0xff] %vm59_vm0, %v93_v25  ;;  %vm106_vm1 = vcmp.eq.f32.partialorder %v98_v26, inf  ;;  %v109_v41 = vand.u32 2147483648, %v98_v26  ;;  %vm108_vm4 = vcmp.eq.f32.partialorder %v98_v26, 0.0 }
  0x9b   :  { %v135_v27 = vpop.eup %134 }
  0x9c   :  { %v100_v28 = vmul.f32 %v135_v27, %v98_v26  ;;  %v111_v29 = vld [vmem:[#allocation3] sm:$0xff] }
  0x9d   :  { %136 = vrsqrt.f32 %v111_v29  ;;  %vm118_vm3 = vweird.f32 %v111_v29 }
  0x9e   :  { %v101_v30 = vmul.f32 %v135_v27, %v100_v28 }
  0xa0   :  { %v102_v31 = vmul.f32 0.5, %v101_v30 }
  0xa2   :  { %v103_v32 = vsub.f32 1.5, %v102_v31 }
  0xa3   :  { %v137_v33 = vpop.eup %136 }
  0xa4   :  { %v104_v34 = vmul.f32 %v135_v27, %v103_v32  ;;  %v113_v35 = vmul.f32 %v137_v33, %v111_v29  ;;  %vm119_vm2 = vweird.f32 %v137_v33 }
  0xa5   :  { %vm120_vm5 = vmor %vm118_vm3, %vm119_vm2 }
  0xa6   :  { %v114_v36 = vmul.f32 %v137_v33, %v113_v35  ;;  %v105_v37 = vmul.f32 %v104_v34, %v98_v26 }
  0xa8   :  { %v115_v38 = vmul.f32 0.5, %v114_v36  ;;  %v107_v40 = vsel %vm106_vm1, %v98_v26, %v105_v37 }
  0xa9   :  { %v110_v43 = vsel %vm108_vm4, %v109_v41, %v107_v40 }
  0xaa   :  { %v116_v39 = vsub.f32 1.5, %v115_v38 }
  0xac   :  { %v117_v42 = vmul.f32 %v137_v33, %v116_v39 }
  0xae   :  { %v121_v44 = vsel %vm120_vm5, %v137_v33, %v117_v42 }
  0xaf   :  { %v122_v45 = vmul.f32 %v121_v44, %v110_v43 }
  0xb1   :  { %123 = vst.msk [vmem:[%s258_s3] sm:$0xff] %vm59_vm0, %v122_v45 }
  0xb2   :  { %128 = vsyncpa [#allocation5], 1 }
  0xb3   :  { %129 = vsyncpa [#allocation7], 1 }

</bundles_post_ra>
